<compile_context>
chip_gen: v7x
topology: tpu7x:2x2x1
jax: 0.10.0
libtpu: 0.0.40
codegen_flags: <defaults>
</compile_context>

<pallas_src>
import jax
import jax.numpy as jnp
from jax.experimental import pallas as pl
from jax.experimental.pallas import tpu as pltpu

_LANE = 128
_SUBLANE = 8


def _round_up(v, m):
    return ((v + m - 1) // m) * m


def _ste_kernel(x_ref, o_ref):
    # Pure VPU elementwise: (x > 0) -> {0, 1} in the output dtype.
    # (x == 0 and NaN both compare False -> 0.0, matching PyTorch.)
    o_ref[...] = (x_ref[...] > 0).astype(o_ref.dtype)


def _chip_params():
    """Return (target block bytes per buffer, TensorCores per chip)."""
    kind = ""
    try:
        kind = jax.devices()[0].device_kind.lower()
    except Exception:
        pass
    if "v7" in kind:
        return 8 << 20, 2   # 3.2 TB/s HBM -> big blocks; 2 TCs share the grid
    if "v6" in kind:
        return 4 << 20, 1   # ~86% of HBM roofline at ~4 MiB blocks
    if "v5" in kind:
        return 2 << 20, 1   # 16 MiB scoped-VMEM default: keep footprint small
    return 2 << 20, 1       # unknown chip: conservative


def straight_through_estimator(x, *, out_dtype=jnp.float32, tile_rows=None):
    """Forward of StraightThroughEstimator: (x > 0).astype(out_dtype), any shape."""
    orig_shape = x.shape
    n = x.size
    if n == 0:
        return jnp.zeros(orig_shape, out_dtype)

    in_item = jnp.dtype(x.dtype).itemsize
    out_item = jnp.dtype(out_dtype).itemsize

    # Pick a 2-D slab view without introducing pad / slice HBM copies.
    if n % _LANE == 0:
        lanes = _LANE               # lane-dense: unmasked vst path
    elif x.ndim >= 2:
        lanes = orig_shape[-1]      # keep the original minor dim as the lanes
    else:
        lanes = n                   # 0-D / 1-D unaligned: single row
    rows = n // lanes
    x2d = x.reshape(rows, lanes)

    # Block rows: target ~target_bytes per buffer, kept a multiple of 8.
    target_bytes, num_cores = _chip_params()
    bytes_per_row = lanes * max(in_item, out_item)
    if tile_rows is None:
        tr = max(_SUBLANE, (target_bytes // bytes_per_row) // _SUBLANE * _SUBLANE)
    else:
        tr = max(_SUBLANE, (tile_rows // _SUBLANE) * _SUBLANE)
    if num_cores >= 2 and rows >= 2 * _SUBLANE:
        # Ensure >= 2 blocks so the "parallel" axis splits across both cores.
        tr = min(tr, _round_up((rows + 1) // 2, _SUBLANE))
    if tr >= rows:
        tr = rows                   # single full-extent block (always legal)

    grid = (pl.cdiv(rows, tr),)

    # 1 input + 1 output, double-buffered by the Pallas pipeline.
    footprint = 2 * tr * lanes * (in_item + out_item)
    compiler_kwargs = dict(dimension_semantics=("parallel",))
    if footprint > (24 << 20):
        # Only triggers for the ~8 MiB v7x blocks (32 MiB footprint vs the
        # 32 MiB scoped default); leaves >=16 MiB physical VMEM for scratch.
        compiler_kwargs["vmem_limit_bytes"] = footprint + (16 << 20)

    out2d = pl.pallas_call(
        _ste_kernel,
        out_shape=jax.ShapeDtypeStruct((rows, lanes), out_dtype),
        grid_spec=pltpu.PrefetchScalarGridSpec(
            num_scalar_prefetch=0,
            grid=grid,
            in_specs=[pl.BlockSpec((tr, lanes), lambda i: (i, 0))],
            out_specs=pl.BlockSpec((tr, lanes), lambda i: (i, 0)),
        ),
        compiler_params=pltpu.CompilerParams(**compiler_kwargs),
        cost_estimate=pl.CostEstimate(
            flops=n,
            transcendentals=0,
            bytes_accessed=n * (in_item + out_item),
        ),
    )(x2d)

    return out2d.reshape(orig_shape)


if __name__ == "__main__":
    key = jax.random.PRNGKey(0)

    # NCHW activation consistent with a conv-AE (batch=2, ch=4, 16x16).
    x = jax.random.normal(key, (2, 4, 16, 16), dtype=jnp.float32)
    y = jax.block_until_ready(straight_through_estimator(x))
    y_ref = (x > 0).astype(jnp.float32)
    assert y.shape == x.shape and y.dtype == jnp.float32
    assert bool(jnp.all(y == y_ref))

    # Lane-aligned size (n % 128 == 0) whose row count (49) is not a multiple
    # of the block: exercises the masked partial trailing block (no pad/slice).
    x2 = jax.random.normal(jax.random.PRNGKey(1), (2, 4, 28, 28), dtype=jnp.float32)
    y2 = jax.block_until_ready(straight_through_estimator(x2, tile_rows=8))
    assert bool(jnp.all(y2 == (x2 > 0).astype(jnp.float32)))

    # Fully unaligned size: exercises the no-copy fallback (last dim as lanes).
    x3 = jax.random.normal(jax.random.PRNGKey(2), (3, 5, 7, 11), dtype=jnp.float32)
    y3 = jax.block_until_ready(straight_through_estimator(x3))
    assert bool(jnp.all(y3 == (x3 > 0).astype(jnp.float32)))

    print("KERNEL_OK")
</pallas_src>

<mosaic_0001>
module attributes {stable_mosaic.version = 11 : i64} {
  func.func @_ste_kernel(%arg0: i32, %arg1: memref<16x128xf32, #tpu.memory_space<vmem>>, %arg2: memref<16x128xf32, #tpu.memory_space<vmem>>) attributes {dimension_semantics = [#tpu.dimension_semantics<parallel>], iteration_bounds = array<i64: 1>, scalar_prefetch = 0 : i64, scratch_operands = 0 : i64, tpu.core_type = #tpu.core_type<tc>, window_params = [{transform_indices = @transform_0, window_bounds = array<i64: 16, 128>}, {transform_indices = @transform_1, window_bounds = array<i64: 16, 128>}]} {
    %c0 = arith.constant 0 : index
    %c0_0 = arith.constant 0 : index
    %0 = vector.load %arg1[%c0, %c0_0] : memref<16x128xf32, #tpu.memory_space<vmem>>, vector<16x128xf32>
    %cst = arith.constant 0.000000e+00 : f32
    %1 = vector.broadcast %cst : f32 to vector<16x128xf32>
    %2 = arith.cmpf ogt, %0, %1 : vector<16x128xf32>
    %3 = arith.extui %2 : vector<16x128xi1> to vector<16x128xi32>
    %4 = arith.sitofp %3 : vector<16x128xi32> to vector<16x128xf32>
    %c0_1 = arith.constant 0 : index
    %c0_2 = arith.constant 0 : index
    %5 = vector.load %arg2[%c0_1, %c0_2] : memref<16x128xf32, #tpu.memory_space<vmem>>, vector<16x128xf32>
    tpu.vector_store %arg2[%c0_1, %c0_2], %4 {strides = array<i32>} : memref<16x128xf32, #tpu.memory_space<vmem>>, vector<16x128xf32>,
    return
  }
  func.func @transform_0(%arg0: i32) -> (i32, i32) {
    %c0_i32 = arith.constant 0 : i32
    %c0_i32_0 = arith.constant 0 : i32
    return %arg0, %c0_i32 : i32, i32
  }
  func.func @transform_1(%arg0: i32) -> (i32, i32) {
    %c0_i32 = arith.constant 0 : i32
    %c0_i32_0 = arith.constant 0 : i32
    return %arg0, %c0_i32 : i32, i32
  }
}

</mosaic_0001>

<bundles_post_ra>
// kernel: tpu_custom_call.1
= control target key start
LH: loop header
LB: loop body
LE: loop exit
PB: predicated region body
PF: predicated region fallthrough
CT: control target
= control target key end

     0   :  { %6 = vsyncpa [#allocation3], 0  ;;  %s150_s0 = inlined_call_operand.hbm [shape: f32[16,128], index: 0, kind: input, shape index: {}]   ;;  %s151_s1 = inlined_call_operand.hbm [shape: f32[16,128], index: 1, kind: output, shape index: {}]  }
   0x1   :  { %7 = vsyncpa [#allocation4], 0  ;;  %s105_s6 = smov [#allocation2]   ;;  %s57_s10 = scalar_lea.hbm %s150_s0, 256 }
   0x2   :  { %s13_s7 = sshll.u32 %s105_s6, 4  ;;  %p58_p0 = scmp.ne.s32.totalorder %s150_s0, %s57_s10  ;;  %s14_s7 = int_to_ptr.vmem [resolvable:$true] %s13_s7 }
   0x3   :  { %p61_p1 = scmp.lt.u32.totalorder %s57_s10, %s150_s0 }
   0x5   :  { %p63_p2 = pnand %p61_p1, %p58_p0 }
   0x7   :  { %66 = shalt.err (!%p63_p2)
}
   0x8   :  { %s67_s15 = scalar_lea.vmem %s14_s7, 256  ;;  %p72_p4 = scmp.lt.s32.totalorder %s14_s7, %s14_s7 }
   0x9   :  { %p68_p3 = scmp.ne.s32.totalorder %s14_s7, %s67_s15  ;;  %p73_p5 = scmp.lt.s32.totalorder %s67_s15, %s67_s15 }
   0xb   :  { %p74_p6 = por %p73_p5, %p72_p4 }
   0xd   :  { %p75_p7 = pnand %p74_p6, %p68_p3 }
   0xf   :  { %78 = shalt.err (!%p75_p7)
}
  0x10   :  { %s106_s16 = smov 128   ;;  %s107_s17 = smov 8  }
  0x11   :  { %19 = dma.hbm_to_vmem [thread:$0]  %s150_s0, 256, %s14_s7, [#allocation3], %s106_s16, %s106_s16, %s107_s17  }
  0x12   :  { %101 = dma.done.wait [#allocation3], 256  }
  0x13   :  { %102 = vsyncadd [#allocation3], 4294967040  ;;  %s108_s20 = smov [#allocation5]   ;;  %v23_v0 = vld [vmem:[#allocation2] sm:$0xff]  ;;  %v24_v1 = vld [vmem:[#allocation2 + $0x8] sm:$0xff]  ;;  %v109_v2 = vmov 0.0  }
  0x14   :  { %s38_s21 = sshll.u32 %s108_s20, 4  ;;  %vm25_vm0 = vcmp.gt.f32.partialorder %v23_v0, 0.0  ;;  %vm26_vm1 = vcmp.gt.f32.partialorder %v24_v1, 0.0  ;;  %s39_s21 = int_to_ptr.vmem [resolvable:$true] %s38_s21 }
  0x15   :  { %v50_v3 = vsel %vm25_vm0, 1.0, %v109_v2  ;;  %v51_v4 = vsel %vm26_vm1, 1.0, %v109_v2  ;;  %s79_s22 = scalar_lea.vmem %s39_s21, 256  ;;  %p84_p9 = scmp.lt.s32.totalorder %s39_s21, %s39_s21 }
  0x16   :  { %31 = vst [vmem:[#allocation5] sm:$0xff] %v50_v3  ;;  %32 = vst [vmem:[#allocation5 + $0x8] sm:$0xff] %v51_v4  ;;  %p80_p8 = scmp.ne.s32.totalorder %s39_s21, %s79_s22  ;;  %p85_p10 = scmp.lt.s32.totalorder %s79_s22, %s79_s22 }
  0x18   :  { %p86_p11 = por %p85_p10, %p84_p9 }
  0x1a   :  { %p87_p12 = pnand %p86_p11, %p80_p8 }
  0x1c   :  { %90 = shalt.err (!%p87_p12)
}
  0x1d   :  { %s91_s24 = scalar_lea.hbm %s151_s1, 256 }
  0x1e   :  { %p92_p13 = scmp.ne.s32.totalorder %s151_s1, %s91_s24  ;;  %p95_p0 = scmp.lt.u32.totalorder %s91_s24, %s151_s1 }
  0x20   :  { %p97_p1 = pnand %p95_p0, %p92_p13 }
  0x22   :  { %100 = shalt.err (!%p97_p1)
}
  0x23   :  { %44 = dma.vmem_to_hbm [thread:$0]  %s39_s21, 256, %s151_s1, [#allocation4], %s106_s16, %s106_s16, %s107_s17  }
  0x24   :  { %103 = dma.done.wait [#allocation4], 256  }
  0x25   :  { %104 = vsyncadd [#allocation4], 4294967040 }
  0x26   :  { %48 = vsyncpa [#allocation3], 1 }
  0x27   :  { %49 = vsyncpa [#allocation4], 1 }

</bundles_post_ra>
